<compile_context>
chip_gen: v7x
topology: tpu7x:2x2x1
jax: 0.10.0
libtpu: 0.0.40
codegen_flags: <defaults>
</compile_context>

<pallas_src>
import jax
import jax.numpy as jnp
from jax.experimental import pallas as pl
from jax.experimental.pallas import tpu as pltpu

# ---- hyper-params (hidden_dim / output_dim / num_layers match the module;
#      input_dim kept small vs. the module default of 5000) ----
BATCH = 4
INPUT_DIM = 512
HIDDEN_DIM = 64      # H; 2H == 128 -> each fused gate pair fills exactly one vreg lane-width
OUTPUT_DIM = 2
FC_PAD = 128         # lane-dense padded FC output width

H = HIDDEN_DIM
G = 6 * H            # fused gate width per layer: [i_f|i_b|g_f|g_b|o_f|o_b]


def _fused_bidir_cell(inp_bf16, w_ref, s_ref, b_ref):
    """Single-timestep bidirectional LSTM layer with zero (h0, c0).

    w_ref is int8 (in, 6H) with per-output-column scales s_ref (1, 6H) f32; columns
    are [i_f|i_b|g_f|g_b|o_f|o_b], each H wide, so every gate slice lands on a
    128-lane boundary.  Returns concat(h_fwd, h_bwd): (B, 2H) bf16."""
    # dequant int8 -> bf16 for the MXU (scale is folded in AFTER the dot, in f32)
    w = w_ref[...].astype(jnp.float32).astype(jnp.bfloat16)
    gates = (jnp.dot(inp_bf16, w, preferred_element_type=jnp.float32)
             * s_ref[...] + b_ref[...])                                    # (B, 6H) f32
    i = jax.nn.sigmoid(gates[:, 0 * 2 * H:1 * 2 * H])                      # [i_f|i_b]
    g = jnp.tanh(gates[:, 1 * 2 * H:2 * 2 * H])                            # [g_f|g_b]
    o = jax.nn.sigmoid(gates[:, 2 * 2 * H:3 * 2 * H])                      # [o_f|o_b]
    # c = i*g because c0 == 0 (f gate irrelevant); h = o * tanh(c)
    return (o * jnp.tanh(i * g)).astype(jnp.bfloat16)                      # (B, 2H) = [h_f|h_b]


def lstm_classifier_kernel(x_ref, w0_ref, s0_ref, b0_ref, w1_ref, s1_ref, b1_ref,
                           wfc_ref, bfc_ref, out_ref):
    x = x_ref[...].astype(jnp.bfloat16)                       # f32 -> bf16 cast folded in-kernel
    y0 = _fused_bidir_cell(x, w0_ref, s0_ref, b0_ref)         # (B, 2H) == concat(h_f0, h_b0)
    y1 = _fused_bidir_cell(y0, w1_ref, s1_ref, b1_ref)        # (B, 2H) == concat(h_f1, h_b1)
    # final linear, lane-dense padded to 128 output lanes, stored bf16
    logits = jnp.dot(y1, wfc_ref[...], preferred_element_type=jnp.float32) + bfc_ref[...]
    out_ref[...] = logits.astype(out_ref.dtype)


def _quantize_per_col(w):
    """Symmetric per-output-column int8 quantization.  w: (in, out) f32."""
    scale = jnp.maximum(jnp.max(jnp.abs(w), axis=0, keepdims=True) / 127.0, 1e-8)   # (1, out)
    w_q = jnp.clip(jnp.round(w / scale), -127, 127).astype(jnp.int8)
    return w_q, scale.astype(jnp.float32)


def _round_up(n, m):
    return ((n + m - 1) // m) * m


def _nbytes(a):
    return a.size * a.dtype.itemsize


def lstm_classifier_forward(x, params, batch_tile=128):
    w0, s0, b0, w1, s1, b1, wfc, bfc = params
    B, D = x.shape

    if B <= batch_tile:
        # single tile: full-array blocks are exempt from the (8,128) rule -> no padding,
        # no separate XLA pad/convert op for x.
        bt, Bp = B, B
        x_in = x
    else:
        bt = batch_tile
        Bp = _round_up(B, bt)
        x_in = x if Bp == B else jnp.zeros((Bp, D), x.dtype).at[:B].set(x)
    n_tiles = Bp // bt

    def resident(arr):
        # constant block index -> weight DMA'd once per call, stays in VMEM across batch tiles
        return pl.BlockSpec(arr.shape, lambda i: (0, 0))

    flops = 2 * Bp * (D * G + 2 * H * G + 2 * H * FC_PAD)
    transcendentals = Bp * 2 * 8 * H
    bytes_accessed = (_nbytes(x_in) + sum(_nbytes(a) for a in params) + Bp * FC_PAD * 2)

    out = pl.pallas_call(
        lstm_classifier_kernel,
        out_shape=jax.ShapeDtypeStruct((Bp, FC_PAD), jnp.bfloat16),
        grid=(n_tiles,),
        in_specs=[pl.BlockSpec((bt, D), lambda i: (i, 0)),
                  resident(w0), resident(s0), resident(b0),
                  resident(w1), resident(s1), resident(b1),
                  resident(wfc), resident(bfc)],
        out_specs=pl.BlockSpec((bt, FC_PAD), lambda i: (i, 0)),
        compiler_params=pltpu.CompilerParams(dimension_semantics=("parallel",)),
        cost_estimate=pl.CostEstimate(flops=flops,
                                      transcendentals=transcendentals,
                                      bytes_accessed=bytes_accessed),
    )(x_in, w0, s0, b0, w1, s1, b1, wfc, bfc)
    return out[:B, :OUTPUT_DIM].astype(jnp.float32)


def init_params(key):
    """PyTorch-style init (U(-1/sqrt(H), 1/sqrt(H))), then: fuse directions, prune the
    dead f gate, pre-transpose to (in, out), quantize LSTM weights to int8 with
    per-output-column f32 scales (biases f32, FC bf16)."""
    D, O = INPUT_DIM, OUTPUT_DIM
    bound_lstm = 1.0 / float(H) ** 0.5
    keys = jax.random.split(key, 32)
    kidx = iter(range(32))

    def u(shape, bound):
        return jax.random.uniform(keys[next(kidx)], shape, jnp.float32, -bound, bound)

    def lstm_dir(in_dim):
        w_ih = u((4 * H, in_dim), bound_lstm)          # PyTorch gate order [i, f, g, o]
        _w_hh = u((4 * H, H), bound_lstm)              # in the module, but h0 == 0 -> unused
        b_ih = u((4 * H,), bound_lstm)
        b_hh = u((4 * H,), bound_lstm)
        b = b_ih + b_hh                                # both biases always added
        # prune dead f gate (rows H:2H)
        return ((w_ih[0:H], w_ih[2 * H:3 * H], w_ih[3 * H:4 * H]),
                (b[0:H], b[2 * H:3 * H], b[3 * H:4 * H]))

    def fuse_layer(in_dim):
        (wf_i, wf_g, wf_o), (bf_i, bf_g, bf_o) = lstm_dir(in_dim)   # forward direction
        (wb_i, wb_g, wb_o), (bb_i, bb_g, bb_o) = lstm_dir(in_dim)   # backward direction
        # column order [i_f|i_b|g_f|g_b|o_f|o_b], pre-transposed to (in, 6H)
        w = jnp.concatenate([wf_i, wb_i, wf_g, wb_g, wf_o, wb_o], axis=0).T
        b = jnp.concatenate([bf_i, bb_i, bf_g, bb_g, bf_o, bb_o]).reshape(1, G)
        w_q, scale = _quantize_per_col(w)              # int8 weights + (1, 6H) f32 scales
        return w_q, scale, b

    w0, s0, b0 = fuse_layer(D)          # (D, 6H) int8, (1, 6H) f32, (1, 6H) f32
    w1, s1, b1 = fuse_layer(2 * H)      # (2H, 6H) int8, ...

    bound_fc = 1.0 / float(2 * H) ** 0.5
    wfc = u((O, 2 * H), bound_fc).T                    # (2H, O)
    bfc = u((O,), bound_fc)
    # lane-dense padding to 128 output lanes; real logits are columns [:O]
    wfc_pad = jnp.zeros((2 * H, FC_PAD), jnp.float32).at[:, :O].set(wfc).astype(jnp.bfloat16)
    bfc_pad = jnp.zeros((1, FC_PAD), jnp.float32).at[:, :O].set(bfc.reshape(1, O))

    return (w0, s0, b0, w1, s1, b1, wfc_pad, bfc_pad)


if __name__ == "__main__":
    key = jax.random.PRNGKey(0)
    k_x, k_p = jax.random.split(key)
    x = jax.random.normal(k_x, (BATCH, INPUT_DIM), jnp.float32)
    params = init_params(k_p)

    out = lstm_classifier_forward(x, params)
    out = jax.block_until_ready(out)
    assert out.shape == (BATCH, OUTPUT_DIM)
    assert bool(jnp.all(jnp.isfinite(out)))
    print("KERNEL_OK")
</pallas_src>

<mosaic_0001>
module attributes {stable_mosaic.version = 11 : i64} {
  func.func @lstm_classifier_kernel(%arg0: i32, %arg1: memref<4x512xf32, #tpu.memory_space<vmem>>, %arg2: memref<512x384xi8, #tpu.memory_space<vmem>>, %arg3: memref<1x384xf32, #tpu.memory_space<vmem>>, %arg4: memref<1x384xf32, #tpu.memory_space<vmem>>, %arg5: memref<128x384xi8, #tpu.memory_space<vmem>>, %arg6: memref<1x384xf32, #tpu.memory_space<vmem>>, %arg7: memref<1x384xf32, #tpu.memory_space<vmem>>, %arg8: memref<128x128xbf16, #tpu.memory_space<vmem>>, %arg9: memref<1x128xf32, #tpu.memory_space<vmem>>, %arg10: memref<4x128xbf16, #tpu.memory_space<vmem>>) attributes {dimension_semantics = [#tpu.dimension_semantics<parallel>], iteration_bounds = array<i64: 1>, scalar_prefetch = 0 : i64, scratch_operands = 0 : i64, tpu.core_type = #tpu.core_type<tc>, window_params = [{transform_indices = @transform_0, window_bounds = array<i64: 4, 512>}, {pipeline_mode = #tpu.pipeline_mode<synchronous>, transform_indices = @transform_1, window_bounds = array<i64: 512, 384>}, {pipeline_mode = #tpu.pipeline_mode<synchronous>, transform_indices = @transform_2, window_bounds = array<i64: 1, 384>}, {pipeline_mode = #tpu.pipeline_mode<synchronous>, transform_indices = @transform_3, window_bounds = array<i64: 1, 384>}, {pipeline_mode = #tpu.pipeline_mode<synchronous>, transform_indices = @transform_4, window_bounds = array<i64: 128, 384>}, {pipeline_mode = #tpu.pipeline_mode<synchronous>, transform_indices = @transform_5, window_bounds = array<i64: 1, 384>}, {pipeline_mode = #tpu.pipeline_mode<synchronous>, transform_indices = @transform_6, window_bounds = array<i64: 1, 384>}, {pipeline_mode = #tpu.pipeline_mode<synchronous>, transform_indices = @transform_7, window_bounds = array<i64: 128, 128>}, {pipeline_mode = #tpu.pipeline_mode<synchronous>, transform_indices = @transform_8, window_bounds = array<i64: 1, 128>}, {transform_indices = @transform_9, window_bounds = array<i64: 4, 128>}]} {
    %c0 = arith.constant 0 : index
    %c0_0 = arith.constant 0 : index
    %0 = vector.load %arg1[%c0, %c0_0] : memref<4x512xf32, #tpu.memory_space<vmem>>, vector<4x512xf32>
    %1 = arith.truncf %0 : vector<4x512xf32> to vector<4x512xbf16>
    %c0_1 = arith.constant 0 : index
    %c0_2 = arith.constant 0 : index
    %2 = vector.load %arg2[%c0_1, %c0_2] : memref<512x384xi8, #tpu.memory_space<vmem>>, vector<512x384xi8>
    %3 = arith.sitofp %2 : vector<512x384xi8> to vector<512x384xf32>
    %4 = arith.truncf %3 : vector<512x384xf32> to vector<512x384xbf16>
    %cst = arith.constant dense<0.000000e+00> : vector<4x384xf32>
    %5 = tpu.matmul %1, %4, %cst {dimension_numbers = #tpu.dot_dimension_numbers<[1], [0], [0], [1], [0, 0, 1, 1], [], []>} : vector<4x512xbf16>, vector<512x384xbf16>, vector<4x384xf32> -> vector<4x384xf32>
    %c0_3 = arith.constant 0 : index
    %c0_4 = arith.constant 0 : index
    %6 = vector.load %arg3[%c0_3, %c0_4] : memref<1x384xf32, #tpu.memory_space<vmem>>, vector<1x384xf32>
    %7 = vector.broadcast %6 : vector<1x384xf32> to vector<4x384xf32>
    %8 = arith.mulf %5, %7 : vector<4x384xf32>
    %c0_5 = arith.constant 0 : index
    %c0_6 = arith.constant 0 : index
    %9 = vector.load %arg4[%c0_5, %c0_6] : memref<1x384xf32, #tpu.memory_space<vmem>>, vector<1x384xf32>
    %10 = vector.broadcast %9 : vector<1x384xf32> to vector<4x384xf32>
    %11 = arith.addf %8, %10 : vector<4x384xf32>
    %12 = vector.extract_strided_slice %11 {offsets = [0, 0], sizes = [4, 128], strides = [1, 1]} : vector<4x384xf32> to vector<4x128xf32>
    %13 = arith.negf %12 : vector<4x128xf32>
    %14 = math.exp %13 : vector<4x128xf32>
    %cst_7 = arith.constant 1.000000e+00 : f32
    %15 = vector.broadcast %cst_7 : f32 to vector<4x128xf32>
    %16 = arith.addf %15, %14 : vector<4x128xf32>
    %17 = arith.divf %15, %16 : vector<4x128xf32>
    %18 = vector.extract_strided_slice %11 {offsets = [0, 128], sizes = [4, 128], strides = [1, 1]} : vector<4x384xf32> to vector<4x128xf32>
    %19 = math.tanh %18 : vector<4x128xf32>
    %20 = vector.extract_strided_slice %11 {offsets = [0, 256], sizes = [4, 128], strides = [1, 1]} : vector<4x384xf32> to vector<4x128xf32>
    %21 = arith.negf %20 : vector<4x128xf32>
    %22 = math.exp %21 : vector<4x128xf32>
    %cst_8 = arith.constant 1.000000e+00 : f32
    %23 = vector.broadcast %cst_8 : f32 to vector<4x128xf32>
    %24 = arith.addf %23, %22 : vector<4x128xf32>
    %25 = arith.divf %23, %24 : vector<4x128xf32>
    %26 = arith.mulf %17, %19 : vector<4x128xf32>
    %27 = math.tanh %26 : vector<4x128xf32>
    %28 = arith.mulf %25, %27 : vector<4x128xf32>
    %29 = arith.truncf %28 : vector<4x128xf32> to vector<4x128xbf16>
    %c0_9 = arith.constant 0 : index
    %c0_10 = arith.constant 0 : index
    %30 = vector.load %arg5[%c0_9, %c0_10] : memref<128x384xi8, #tpu.memory_space<vmem>>, vector<128x384xi8>
    %31 = arith.sitofp %30 : vector<128x384xi8> to vector<128x384xf32>
    %32 = arith.truncf %31 : vector<128x384xf32> to vector<128x384xbf16>
    %cst_11 = arith.constant dense<0.000000e+00> : vector<4x384xf32>
    %33 = tpu.matmul %29, %32, %cst_11 {dimension_numbers = #tpu.dot_dimension_numbers<[1], [0], [0], [1], [0, 0, 1, 1], [], []>} : vector<4x128xbf16>, vector<128x384xbf16>, vector<4x384xf32> -> vector<4x384xf32>
    %c0_12 = arith.constant 0 : index
    %c0_13 = arith.constant 0 : index
    %34 = vector.load %arg6[%c0_12, %c0_13] : memref<1x384xf32, #tpu.memory_space<vmem>>, vector<1x384xf32>
    %35 = vector.broadcast %34 : vector<1x384xf32> to vector<4x384xf32>
    %36 = arith.mulf %33, %35 : vector<4x384xf32>
    %c0_14 = arith.constant 0 : index
    %c0_15 = arith.constant 0 : index
    %37 = vector.load %arg7[%c0_14, %c0_15] : memref<1x384xf32, #tpu.memory_space<vmem>>, vector<1x384xf32>
    %38 = vector.broadcast %37 : vector<1x384xf32> to vector<4x384xf32>
    %39 = arith.addf %36, %38 : vector<4x384xf32>
    %40 = vector.extract_strided_slice %39 {offsets = [0, 0], sizes = [4, 128], strides = [1, 1]} : vector<4x384xf32> to vector<4x128xf32>
    %41 = arith.negf %40 : vector<4x128xf32>
    %42 = math.exp %41 : vector<4x128xf32>
    %cst_16 = arith.constant 1.000000e+00 : f32
    %43 = vector.broadcast %cst_16 : f32 to vector<4x128xf32>
    %44 = arith.addf %43, %42 : vector<4x128xf32>
    %45 = arith.divf %43, %44 : vector<4x128xf32>
    %46 = vector.extract_strided_slice %39 {offsets = [0, 128], sizes = [4, 128], strides = [1, 1]} : vector<4x384xf32> to vector<4x128xf32>
    %47 = math.tanh %46 : vector<4x128xf32>
    %48 = vector.extract_strided_slice %39 {offsets = [0, 256], sizes = [4, 128], strides = [1, 1]} : vector<4x384xf32> to vector<4x128xf32>
    %49 = arith.negf %48 : vector<4x128xf32>
    %50 = math.exp %49 : vector<4x128xf32>
    %cst_17 = arith.constant 1.000000e+00 : f32
    %51 = vector.broadcast %cst_17 : f32 to vector<4x128xf32>
    %52 = arith.addf %51, %50 : vector<4x128xf32>
    %53 = arith.divf %51, %52 : vector<4x128xf32>
    %54 = arith.mulf %45, %47 : vector<4x128xf32>
    %55 = math.tanh %54 : vector<4x128xf32>
    %56 = arith.mulf %53, %55 : vector<4x128xf32>
    %57 = arith.truncf %56 : vector<4x128xf32> to vector<4x128xbf16>
    %c0_18 = arith.constant 0 : index
    %c0_19 = arith.constant 0 : index
    %58 = vector.load %arg8[%c0_18, %c0_19] : memref<128x128xbf16, #tpu.memory_space<vmem>>, vector<128x128xbf16>
    %cst_20 = arith.constant dense<0.000000e+00> : vector<4x128xf32>
    %59 = tpu.matmul %57, %58, %cst_20 {dimension_numbers = #tpu.dot_dimension_numbers<[1], [0], [0], [1], [0, 0, 1, 1], [], []>} : vector<4x128xbf16>, vector<128x128xbf16>, vector<4x128xf32> -> vector<4x128xf32>
    %c0_21 = arith.constant 0 : index
    %c0_22 = arith.constant 0 : index
    %60 = vector.load %arg9[%c0_21, %c0_22] : memref<1x128xf32, #tpu.memory_space<vmem>>, vector<1x128xf32>
    %61 = vector.broadcast %60 : vector<1x128xf32> to vector<4x128xf32>
    %62 = arith.addf %59, %61 : vector<4x128xf32>
    %63 = arith.truncf %62 : vector<4x128xf32> to vector<4x128xbf16>
    %c0_23 = arith.constant 0 : index
    %c0_24 = arith.constant 0 : index
    %64 = vector.load %arg10[%c0_23, %c0_24] : memref<4x128xbf16, #tpu.memory_space<vmem>>, vector<4x128xbf16>
    tpu.vector_store %arg10[%c0_23, %c0_24], %63 {strides = array<i32>} : memref<4x128xbf16, #tpu.memory_space<vmem>>, vector<4x128xbf16>,
    return
  }
  func.func @transform_0(%arg0: i32) -> (i32, i32) {
    %c0_i32 = arith.constant 0 : i32
    %c0_i32_0 = arith.constant 0 : i32
    return %arg0, %c0_i32 : i32, i32
  }
  func.func @transform_1(%arg0: i32) -> (i32, i32) {
    %c0_i32 = arith.constant 0 : i32
    %c0_i32_0 = arith.constant 0 : i32
    %c0_i32_1 = arith.constant 0 : i32
    return %c0_i32, %c0_i32_0 : i32, i32
  }
  func.func @transform_2(%arg0: i32) -> (i32, i32) {
    %c0_i32 = arith.constant 0 : i32
    %c0_i32_0 = arith.constant 0 : i32
    %c0_i32_1 = arith.constant 0 : i32
    return %c0_i32, %c0_i32_0 : i32, i32
  }
  func.func @transform_3(%arg0: i32) -> (i32, i32) {
    %c0_i32 = arith.constant 0 : i32
    %c0_i32_0 = arith.constant 0 : i32
    %c0_i32_1 = arith.constant 0 : i32
    return %c0_i32, %c0_i32_0 : i32, i32
  }
  func.func @transform_4(%arg0: i32) -> (i32, i32) {
    %c0_i32 = arith.constant 0 : i32
    %c0_i32_0 = arith.constant 0 : i32
    %c0_i32_1 = arith.constant 0 : i32
    return %c0_i32, %c0_i32_0 : i32, i32
  }
  func.func @transform_5(%arg0: i32) -> (i32, i32) {
    %c0_i32 = arith.constant 0 : i32
    %c0_i32_0 = arith.constant 0 : i32
    %c0_i32_1 = arith.constant 0 : i32
    return %c0_i32, %c0_i32_0 : i32, i32
  }
  func.func @transform_6(%arg0: i32) -> (i32, i32) {
    %c0_i32 = arith.constant 0 : i32
    %c0_i32_0 = arith.constant 0 : i32
    %c0_i32_1 = arith.constant 0 : i32
    return %c0_i32, %c0_i32_0 : i32, i32
  }
  func.func @transform_7(%arg0: i32) -> (i32, i32) {
    %c0_i32 = arith.constant 0 : i32
    %c0_i32_0 = arith.constant 0 : i32
    %c0_i32_1 = arith.constant 0 : i32
    return %c0_i32, %c0_i32_0 : i32, i32
  }
  func.func @transform_8(%arg0: i32) -> (i32, i32) {
    %c0_i32 = arith.constant 0 : i32
    %c0_i32_0 = arith.constant 0 : i32
    %c0_i32_1 = arith.constant 0 : i32
    return %c0_i32, %c0_i32_0 : i32, i32
  }
  func.func @transform_9(%arg0: i32) -> (i32, i32) {
    %c0_i32 = arith.constant 0 : i32
    %c0_i32_0 = arith.constant 0 : i32
    return %arg0, %c0_i32 : i32, i32
  }
}

</mosaic_0001>

<bundles_post_ra>
// kernel: tpu_custom_call.1
= control target key start
LH: loop header
LB: loop body
LE: loop exit
PB: predicated region body
PF: predicated region fallthrough
CT: control target
= control target key end

     0   :  { %14 = vsyncpa [#allocation3], 0  ;;  %s1254_s0 = inlined_call_operand.hbm [shape: f32[4,512], index: 0, kind: input, shape index: {}]   ;;  %s1255_s1 = inlined_call_operand.hbm [shape: s8[512,384], index: 1, kind: input, shape index: {}]   ;;  %s1256_s2 = inlined_call_operand.vmem [shape: f32[1,384], index: 2, kind: input, shape index: {}]   ;;  %s1257_s3 = inlined_call_operand.vmem [shape: f32[1,384], index: 3, kind: input, shape index: {}]   ;;  %s1258_s4 = inlined_call_operand.hbm [shape: s8[128,384], index: 4, kind: input, shape index: {}]   ;;  %s1259_s5 = inlined_call_operand.vmem [shape: f32[1,384], index: 5, kind: input, shape index: {}]   ;;  %s1260_s6 = inlined_call_operand.vmem [shape: f32[1,384], index: 6, kind: input, shape index: {}]   ;;  %s1261_s7 = inlined_call_operand.hbm [shape: bf16[128,128], index: 7, kind: input, shape index: {}]   ;;  %s1262_s8 = inlined_call_operand.vmem [shape: f32[1,128], index: 8, kind: input, shape index: {}]   ;;  %s1263_s9 = inlined_call_operand.hbm [shape: bf16[4,128], index: 9, kind: output, shape index: {}]  }
   0x1   :  { %15 = vsyncpa [#allocation6], 0 }
   0x2   :  { %16 = vsyncpa [#allocation9], 0 }
   0x3   :  { %17 = vsyncpa [#allocation4], 0  ;;  %s1049_s30 = smov [#allocation5]   ;;  %s931_s13 = scalar_lea.hbm %s1255_s1, 6144 }
   0x4   :  { %s33_s10 = sshll.u32 %s1049_s30, 4  ;;  %p932_p0 = scmp.ne.s32.totalorder %s1255_s1, %s931_s13  ;;  %s34_s10 = int_to_ptr.vmem [resolvable:$true] %s33_s10 }
   0x5   :  { %p935_p1 = scmp.lt.u32.totalorder %s931_s13, %s1255_s1 }
   0x7   :  { %p937_p2 = pnand %p935_p1, %p932_p0 }
   0x9   :  { %940 = shalt.err (!%p937_p2)
}
   0xa   :  { %s941_s18 = scalar_lea.vmem %s34_s10, 6144  ;;  %p946_p4 = scmp.lt.s32.totalorder %s34_s10, %s34_s10 }
   0xb   :  { %p942_p3 = scmp.ne.s32.totalorder %s34_s10, %s941_s18  ;;  %p947_p5 = scmp.lt.s32.totalorder %s941_s18, %s941_s18 }
   0xd   :  { %p948_p6 = por %p947_p5, %p946_p4 }
   0xf   :  { %p949_p7 = pnand %p948_p6, %p942_p3 }
  0x11   :  { %952 = shalt.err (!%p949_p7)
}
  0x12   :  { %s1050_s19 = smov 384   ;;  %s1051_s20 = smov 24  }
  0x13   :  { %39 = dma.hbm_to_vmem [thread:$0]  %s1255_s1, 6144, %s34_s10, [#allocation6], %s1050_s19, %s1050_s19, %s1051_s20  }
  0x14   :  { %s1052_s23 = smov [#allocation2]   ;;  %s1053_s25 = smov [#allocation7]  }
  0x15   :  { %s24_s24 = sshll.u32 %s1052_s23, 4  ;;  %s49_s26 = sshll.u32 %s1053_s25, 4  ;;  %s25_s24 = int_to_ptr.vmem [resolvable:$true] %s24_s24  ;;  %s50_s26 = int_to_ptr.vmem [resolvable:$true] %s49_s26 }
  0x16   :  { %s953_s29 = scalar_lea.hbm %s1254_s0, 256 }
  0x17   :  { %p954_p8 = scmp.ne.s32.totalorder %s1254_s0, %s953_s29  ;;  %p957_p9 = scmp.lt.u32.totalorder %s953_s29, %s1254_s0 }
  0x19   :  { %p959_p10 = pnand %p957_p9, %p954_p8 }
  0x1b   :  { %962 = shalt.err (!%p959_p10)
}
  0x1c   :  { %s963_s1 = scalar_lea.vmem %s25_s24, 256  ;;  %p968_p12 = scmp.lt.s32.totalorder %s25_s24, %s25_s24 }
  0x1d   :  { %p964_p11 = scmp.ne.s32.totalorder %s25_s24, %s963_s1  ;;  %p969_p13 = scmp.lt.s32.totalorder %s963_s1, %s963_s1 }
  0x1f   :  { %p970_p0 = por %p969_p13, %p968_p12 }
  0x21   :  { %p971_p1 = pnand %p970_p0, %p964_p11 }
  0x23   :  { %974 = shalt.err (!%p971_p1)
}
  0x24   :  { %27 = dma.hbm_to_vmem [thread:$0]  %s1254_s0, 256, %s25_s24, [#allocation3]  }
  0x25   :  { %s975_s17 = scalar_lea.hbm %s1258_s4, 1536 }
  0x26   :  { %p976_p2 = scmp.ne.s32.totalorder %s1258_s4, %s975_s17  ;;  %p979_p3 = scmp.lt.u32.totalorder %s975_s17, %s1258_s4 }
  0x28   :  { %p981_p4 = pnand %p979_p3, %p976_p2 }
  0x2a   :  { %984 = shalt.err (!%p981_p4)
}
  0x2b   :  { %s985_s25 = scalar_lea.vmem %s50_s26, 1536  ;;  %p990_p6 = scmp.lt.s32.totalorder %s50_s26, %s50_s26 }
  0x2c   :  { %p986_p5 = scmp.ne.s32.totalorder %s50_s26, %s985_s25  ;;  %p991_p7 = scmp.lt.s32.totalorder %s985_s25, %s985_s25 }
  0x2e   :  { %p992_p8 = por %p991_p7, %p990_p6 }
  0x30   :  { %p993_p9 = pnand %p992_p8, %p986_p5 }
  0x32   :  { %996 = shalt.err (!%p993_p9)
}
  0x33   :  { %55 = dma.hbm_to_vmem [thread:$0]  %s1258_s4, 1536, %s50_s26, [#allocation6], %s1050_s19, %s1050_s19, %s1051_s20  }
  0x34   :  { %s1054_s27 = smov [#allocation8]   ;;  %s997_s11 = scalar_lea.hbm %s1261_s7, 1024 }
  0x35   :  { %s65_s28 = sshll.u32 %s1054_s27, 4  ;;  %p998_p10 = scmp.ne.s32.totalorder %s1261_s7, %s997_s11  ;;  %s66_s28 = int_to_ptr.vmem [resolvable:$true] %s65_s28 }
  0x36   :  { %p1001_p11 = scmp.lt.u32.totalorder %s997_s11, %s1261_s7 }
  0x38   :  { %p1003_p12 = pnand %p1001_p11, %p998_p10 }
  0x3a   :  { %1006 = shalt.err (!%p1003_p12)
}
  0x3b   :  { %s1007_s14 = scalar_lea.vmem %s66_s28, 1024  ;;  %p1012_p0 = scmp.lt.s32.totalorder %s66_s28, %s66_s28 }
  0x3c   :  { %p1008_p13 = scmp.ne.s32.totalorder %s66_s28, %s1007_s14  ;;  %p1013_p1 = scmp.lt.s32.totalorder %s1007_s14, %s1007_s14 }
  0x3e   :  { %p1014_p2 = por %p1013_p1, %p1012_p0 }
  0x40   :  { %p1015_p3 = pnand %p1014_p2, %p1008_p13 }
  0x42   :  { %1018 = shalt.err (!%p1015_p3)
}
  0x43   :  { %s1055_s4 = smov 64   ;;  %s1056_s19 = smov 4  }
  0x44   :  { %71 = dma.hbm_to_vmem [thread:$0]  %s1261_s7, 1024, %s66_s28, [#allocation9], %s1055_s4, %s1055_s4, %s1056_s19  }
  0x45   :  { %1041 = dma.done.wait [#allocation3], 256  }
  0x46   :  { %1042 = vsyncadd [#allocation3], 4294967040 }
  0x47   :  { %1043 = dma.done.wait [#allocation6], 7680  }
  0x48   :  { %1044 = vsyncadd [#allocation6], 4294959616 }
  0x49   :  { %1045 = dma.done.wait [#allocation9], 1024  }
  0x4a   :  { %1046 = vsyncadd [#allocation9], 4294966272  ;;  %v100_v0 = vld [vmem:[#allocation5 + $0x8] sm:$0xff]  ;;  %v99_v1 = vld [vmem:[#allocation5] sm:$0xff]  ;;  %vm1059_vm0 = vmmov 0   ;;  %s1060_s22 = smov [#allocation10]  }
  0x4b   :  { %v148_v2 = vunpack.c.l.s8.bf16 %v100_v0  ;;  %v151_v3 = vunpack.c.h.s8.bf16 %v100_v0  ;;  %v147_v4 = vunpack.c.l.s8.bf16 %v99_v1  ;;  %v103_v5 = vld [vmem:[#allocation5 + $0x20] sm:$0xff]  ;;  %v113_v6 = vld [vmem:[#allocation5 + $0x70] sm:$0xff]  ;;  %v150_v7 = vunpack.c.h.s8.bf16 %v99_v1  ;;  %v102_v10 = vld [vmem:[#allocation5 + $0x18] sm:$0xff]  ;;  %s755_s23 = sshll.u32 %s1060_s22, 4  ;;  %s756_s23 = int_to_ptr.vmem [resolvable:$true] %s755_s23 }
  0x4c   :  { %v101_v8 = vld [vmem:[#allocation5 + $0x10] sm:$0xff]  ;;  %v154_v9 = vunpack.c.l.s8.bf16 %v103_v5  ;;  %v173_v11 = vunpack.c.l.s8.bf16 %v113_v6  ;;  %v176_v12 = vunpack.c.h.s8.bf16 %v113_v6  ;;  %v116_v14 = vld [vmem:[#allocation5 + $0x88] sm:$0xff]  ;;  %v153_v15 = vunpack.c.l.s8.bf16 %v102_v10  ;;  %v106_v19 = vld [vmem:[#allocation5 + $0x38] sm:$0xff]  ;;  %s1019_s25 = scalar_lea.vmem %s756_s23, 32  ;;  %p1024_p5 = scmp.lt.s32.totalorder %s756_s23, %s756_s23 }
  0x4d   :  { %243 = vmatprep.subr.bf16.mxu0 %v148_v2  ;;  %v149_v13 = vunpack.c.l.s8.bf16 %v101_v8  ;;  %v157_v16 = vunpack.c.h.s8.bf16 %v103_v5  ;;  %v152_v17 = vunpack.c.h.s8.bf16 %v101_v8  ;;  %v1165_v18 = vld [vmem:[#allocation2] sm:$0xff]  ;;  %v179_v20 = vunpack.c.l.s8.bf16 %v116_v14  ;;  %v104_v21 = vld [vmem:[#allocation5 + $0x28] sm:$0xff]  ;;  %v119_v29 = vld [vmem:[#allocation5 + $0xa0] sm:$0xff]  ;;  %p1020_p4 = scmp.ne.s32.totalorder %s756_s23, %s1019_s25  ;;  %p1025_p6 = scmp.lt.s32.totalorder %s1019_s25, %s1019_s25 }
  0x4e   :  { %244 = vmatpush1.bf16.msra.mxu0 %v147_v4  ;;  %779 = vmatprep.subr.bf16.mxu1 %v173_v11  ;;  %v156_v22 = vunpack.c.h.s8.bf16 %v102_v10  ;;  %v91_v23 = vcombine.high %v1165_v18, %v1165_v18  ;;  %v160_v24 = vunpack.c.l.s8.bf16 %v106_v19  ;;  %v105_v25 = vld [vmem:[#allocation5 + $0x30] sm:$0xff]  ;;  %v155_v26 = vunpack.c.l.s8.bf16 %v104_v21  ;;  %v107_v32 = vld [vmem:[#allocation5 + $0x40] sm:$0xff]  ;;  %v108_v36 = vld [vmem:[#allocation5 + $0x48] sm:$0xff] }
  0x4f   :  { %245 = vmatprep.subr.bf16.mxu0 %v151_v3  ;;  %780 = vmatpush3.bf16.msra.mxu1 %v149_v13  ;;  %v182_v27 = vunpack.c.h.s8.bf16 %v116_v14  ;;  %v159_v30 = vunpack.c.l.s8.bf16 %v105_v25  ;;  %v109_v31 = vld [vmem:[#allocation5 + $0x50] sm:$0xff]  ;;  %v163_v33 = vunpack.c.h.s8.bf16 %v106_v19  ;;  %v158_v34 = vunpack.c.h.s8.bf16 %v104_v21  ;;  %v122_v41 = vld [vmem:[#allocation5 + $0xb8] sm:$0xff]  ;;  %v112_v45 = vld [vmem:[#allocation5 + $0x68] sm:$0xff]  ;;  %p1026_p7 = por %p1025_p6, %p1024_p5 }
  0x50   :  { %781 = vmatprep.subr.bf16.mxu1 %v176_v12  ;;  %v96_v28 = vpack.c.bf16 %v91_v23, %v91_v23  ;;  %v185_v35 = vunpack.c.l.s8.bf16 %v119_v29  ;;  %v162_v37 = vunpack.c.h.s8.bf16 %v105_v25  ;;  %v166_v38 = vunpack.c.l.s8.bf16 %v109_v31  ;;  %v110_v47 = vld [vmem:[#allocation5 + $0x58] sm:$0xff]  ;;  %v111_v50 = vld [vmem:[#allocation5 + $0x60] sm:$0xff]  ;;  %v137_v53 = vld [vmem:[#allocation5 + $0x130] sm:$0xff] }
  0x51   :  { %v161_v39 = vunpack.c.l.s8.bf16 %v107_v32  ;;  %v188_v40 = vunpack.c.h.s8.bf16 %v119_v29  ;;  %v165_v42 = vunpack.c.l.s8.bf16 %v108_v36  ;;  %v169_v43 = vunpack.c.h.s8.bf16 %v109_v31  ;;  %v1169_v54 = vld [vmem:[#allocation2 + $0x8] sm:$0xff]  ;;  %v115_v58 = vld [vmem:[#allocation5 + $0x80] sm:$0xff]  ;;  %v125_v60 = vld [vmem:[#allocation5 + $0xd0] sm:$0xff]  ;;  %p1027_p8 = pnand %p1026_p7, %p1020_p4 }
  0x52   :  { %246 = vmatpush1.bf16.msra.mxu0 %v150_v7  ;;  %275 = vmatprep.mubr.bf16.mxu0 %v96_v28  ;;  %v164_v44 = vunpack.c.h.s8.bf16 %v107_v32  ;;  %v191_v46 = vunpack.c.l.s8.bf16 %v122_v41  ;;  %v168_v48 = vunpack.c.h.s8.bf16 %v108_v36  ;;  %v172_v49 = vunpack.c.l.s8.bf16 %v112_v45  ;;  %v114_v0 = vld [vmem:[#allocation5 + $0x78] sm:$0xff]  ;;  %v140_v5 = vld [vmem:[#allocation5 + $0x148] sm:$0xff]  ;;  %v117_v14 = vld [vmem:[#allocation5 + $0x90] sm:$0xff] }
  0x53   :  { %247 = vmatprep.subr.bf16.mxu0 %v154_v9  ;;  %782 = vmatpush3.bf16.msra.mxu1 %v152_v17  ;;  %v167_v51 = vunpack.c.l.s8.bf16 %v110_v47  ;;  %v194_v52 = vunpack.c.h.s8.bf16 %v122_v41  ;;  %v171_v55 = vunpack.c.l.s8.bf16 %v111_v50  ;;  %v175_v56 = vunpack.c.h.s8.bf16 %v112_v45  ;;  %v118_v9 = vld [vmem:[#allocation5 + $0x98] sm:$0xff]  ;;  %v128_v11 = vld [vmem:[#allocation5 + $0xe8] sm:$0xff]  ;;  %v143_v17 = vld [vmem:[#allocation5 + $0x160] sm:$0xff] }
  0x54   :  { %783 = vmatprep.subr.bf16.mxu1 %v179_v20  ;;  %357 = vmatprep.mubr.bf16.mxu1 %v96_v28  ;;  %v170_v57 = vunpack.c.h.s8.bf16 %v110_v47  ;;  %v221_v59 = vunpack.c.l.s8.bf16 %v137_v53  ;;  %v92_v61 = vcombine.high %v1169_v54, %v1169_v54  ;;  %v174_v62 = vunpack.c.h.s8.bf16 %v111_v50  ;;  %v121_v21 = vld [vmem:[#allocation5 + $0xb0] sm:$0xff]  ;;  %v131_v23 = vld [vmem:[#allocation5 + $0x100] sm:$0xff]  ;;  %v146_v29 = vld [vmem:[#allocation5 + $0x178] sm:$0xff] }
  0x55   :  { %v178_v63 = vunpack.c.l.s8.bf16 %v115_v58  ;;  %v197_v1 = vunpack.c.l.s8.bf16 %v125_v60  ;;  %v1175_v2 = vpack.c.bf16 %v1165_v18, %v1165_v18  ;;  %v224_v3 = vunpack.c.h.s8.bf16 %v137_v53 }
  0x56   :  { %248 = vmatpush1.bf16.msra.mxu0 %v153_v15  ;;  %v1177_v4 = vpack.c.bf16 %v92_v61, %v92_v61  ;;  %v177_v6 = vunpack.c.l.s8.bf16 %v114_v0  ;;  %v181_v7 = vunpack.c.h.s8.bf16 %v115_v58  ;;  %v200_v8 = vunpack.c.h.s8.bf16 %v125_v60  ;;  %v132_v60 = vld [vmem:[#allocation5 + $0x108] sm:$0xff] }
  0x57   :  { %249 = vmatprep.subr.bf16.mxu0 %v157_v16  ;;  %784 = vmatpush3.bf16.msra.mxu1 %v155_v26  ;;  %v227_v10 = vunpack.c.l.s8.bf16 %v140_v5  ;;  %v180_v12 = vunpack.c.h.s8.bf16 %v114_v0  ;;  %v184_v13 = vunpack.c.l.s8.bf16 %v118_v9  ;;  %v203_v15 = vunpack.c.l.s8.bf16 %v128_v11  ;;  %v120_v26 = vld [vmem:[#allocation5 + $0xa8] sm:$0xff] }
  0x58   :  { %785 = vmatprep.subr.bf16.mxu1 %v182_v27  ;;  %v230_v16 = vunpack.c.h.s8.bf16 %v140_v5  ;;  %v183_v18 = vunpack.c.l.s8.bf16 %v117_v14  ;;  %v187_v19 = vunpack.c.h.s8.bf16 %v118_v9  ;;  %v206_v20 = vunpack.c.h.s8.bf16 %v128_v11  ;;  %v139_v5 = vld [vmem:[#allocation5 + $0x140] sm:$0xff]  ;;  %v142_v11 = vld [vmem:[#allocation5 + $0x158] sm:$0xff] }
  0x59   :  { %v190_v25 = vunpack.c.l.s8.bf16 %v121_v21  ;;  %v209_v27 = vunpack.c.l.s8.bf16 %v131_v23  ;;  %v236_v28 = vunpack.c.h.s8.bf16 %v143_v17  ;;  %v193_v31 = vunpack.c.h.s8.bf16 %v121_v21 }
  0x5a   :  { %250 = vmatpush1.bf16.msra.mxu0 %v156_v22  ;;  %v233_v22 = vunpack.c.l.s8.bf16 %v143_v17  ;;  %v212_v32 = vunpack.c.h.s8.bf16 %v131_v23  ;;  %v192_v36 = vunpack.c.h.s8.bf16 %v120_v26  ;;  %v213_v61 = vunpack.c.l.s8.bf16 %v132_v60  ;;  %v145_v17 = vld [vmem:[#allocation5 + $0x170] sm:$0xff] }
  0x5b   :  { %251 = vmatprep.subr.bf16.mxu0 %v160_v24  ;;  %786 = vmatpush3.bf16.msra.mxu1 %v158_v34  ;;  %v186_v24 = vunpack.c.h.s8.bf16 %v117_v14  ;;  %v239_v34 = vunpack.c.l.s8.bf16 %v146_v29  ;;  %v216_v0 = vunpack.c.h.s8.bf16 %v132_v60  ;;  %v141_v14 = vld [vmem:[#allocation5 + $0x150] sm:$0xff] }
  0x5c   :  { %787 = vmatprep.subr.bf16.mxu1 %v185_v35  ;;  %v134_v35 = vld [vmem:[#allocation5 + $0x118] sm:$0xff] }
  0x5e   :  { %252 = vmatpush1.bf16.msra.mxu0 %v159_v30  ;;  %v189_v30 = vunpack.c.l.s8.bf16 %v120_v26  ;;  %v462_v26 = vld [vmem:[#allocation7] sm:$0xff] }
  0x5f   :  { %253 = vmatprep.subr.bf16.mxu0 %v163_v33  ;;  %788 = vmatpush3.bf16.msra.mxu1 %v161_v39  ;;  %v124_v33 = vld [vmem:[#allocation5 + $0xc8] sm:$0xff]  ;;  %v215_v39 = vunpack.c.l.s8.bf16 %v134_v35 }
  0x60   :  { %789 = vmatprep.subr.bf16.mxu1 %v188_v40  ;;  %v242_v40 = vunpack.c.h.s8.bf16 %v146_v29  ;;  %v477_v29 = vunpack.c.h.s8.bf16 %v462_v26 }
  0x62   :  { %254 = vmatpush1.bf16.msra.mxu0 %v162_v37  ;;  %v196_v37 = vunpack.c.l.s8.bf16 %v124_v33 }
  0x63   :  { %255 = vmatprep.subr.bf16.mxu0 %v166_v38  ;;  %790 = vmatpush3.bf16.msra.mxu1 %v164_v44  ;;  %v123_v38 = vld [vmem:[#allocation5 + $0xc0] sm:$0xff] }
  0x64   :  { %791 = vmatprep.subr.bf16.mxu1 %v191_v46  ;;  %v195_v41 = vunpack.c.l.s8.bf16 %v123_v38  ;;  %v127_v44 = vld [vmem:[#allocation5 + $0xe0] sm:$0xff]  ;;  %v198_v45 = vunpack.c.h.s8.bf16 %v123_v38  ;;  %v1184_v46 = vpack.c.bf16 %v1169_v54, %v1169_v54  ;;  %v468_v38 = vld [vmem:[#allocation7 + $0x30] sm:$0xff] }
  0x65   :  { %v202_v47 = vunpack.c.l.s8.bf16 %v127_v44  ;;  %v205_v50 = vunpack.c.h.s8.bf16 %v127_v44 }
  0x66   :  { %256 = vmatpush1.bf16.msra.mxu0 %v165_v42  ;;  %v199_v42 = vunpack.c.h.s8.bf16 %v124_v33 }
  0x67   :  { %257 = vmatprep.subr.bf16.mxu0 %v169_v43  ;;  %792 = vmatpush3.bf16.msra.mxu1 %v167_v51  ;;  %v218_v43 = vunpack.c.h.s8.bf16 %v134_v35  ;;  %v130_v51 = vld [vmem:[#allocation5 + $0xf8] sm:$0xff] }
  0x68   :  { %793 = vmatprep.subr.bf16.mxu1 %v194_v52  ;;  %v208_v53 = vunpack.c.l.s8.bf16 %v130_v51 }
  0x6a   :  { %258 = vmatpush1.bf16.msra.mxu0 %v168_v48  ;;  %v126_v48 = vld [vmem:[#allocation5 + $0xd8] sm:$0xff] }
  0x6b   :  { %259 = vmatprep.subr.bf16.mxu0 %v172_v49  ;;  %794 = vmatpush3.bf16.msra.mxu1 %v170_v57  ;;  %v201_v49 = vunpack.c.l.s8.bf16 %v126_v48  ;;  %v204_v52 = vunpack.c.h.s8.bf16 %v126_v48  ;;  %v133_v57 = vld [vmem:[#allocation5 + $0x110] sm:$0xff] }
  0x6c   :  { %801 = vmatprep.subr.bf16.mxu1 %v221_v59  ;;  %v214_v59 = vunpack.c.l.s8.bf16 %v133_v57 }
  0x6e   :  { %260 = vmatpush1.bf16.msra.mxu0 %v171_v55  ;;  %358 = vmatmul.mubr.bf16.vlgmr.msra.gmra.mrb[0].mxu1 %v1175_v2  ;;  %v129_v55 = vld [vmem:[#allocation5 + $0xf0] sm:$0xff] }
  0x6f   :  { %261 = vmatprep.subr.bf16.mxu0 %v175_v56  ;;  %802 = vmatpush3.bf16.msra.mxu1 %v197_v1  ;;  %v207_v54 = vunpack.c.l.s8.bf16 %v129_v55  ;;  %v211_v56 = vunpack.c.h.s8.bf16 %v130_v51  ;;  %v210_v58 = vunpack.c.h.s8.bf16 %v129_v55 }
  0x70   :  { %803 = vmatprep.subr.bf16.mxu1 %v224_v3  ;;  %397 = vmatprep.mubr.bf16.mxu1 %v1177_v4 }
  0x72   :  { %262 = vmatpush1.bf16.msra.mxu0 %v174_v62  ;;  %v217_v62 = vunpack.c.h.s8.bf16 %v133_v57 }
  0x73   :  { %263 = vmatprep.subr.bf16.mxu0 %v178_v63  ;;  %804 = vmatpush3.bf16.msra.mxu1 %v200_v8  ;;  %v136_v63 = vld [vmem:[#allocation5 + $0x128] sm:$0xff]  ;;  %v138_v8 = vld [vmem:[#allocation5 + $0x138] sm:$0xff] }
  0x74   :  { %805 = vmatprep.subr.bf16.mxu1 %v227_v10  ;;  %v220_v1 = vunpack.c.l.s8.bf16 %v136_v63  ;;  %v225_v9 = vunpack.c.l.s8.bf16 %v138_v8  ;;  %v229_v10 = vunpack.c.h.s8.bf16 %v139_v5 }
  0x76   :  { %264 = vmatpush1.bf16.msra.mxu0 %v177_v6 }
  0x77   :  { %265 = vmatprep.subr.bf16.mxu0 %v181_v7  ;;  %806 = vmatpush3.bf16.msra.mxu1 %v203_v15  ;;  %v226_v7 = vunpack.c.l.s8.bf16 %v139_v5  ;;  %v231_v15 = vunpack.c.l.s8.bf16 %v141_v14 }
  0x78   :  { %807 = vmatprep.subr.bf16.mxu1 %v230_v16  ;;  %v235_v16 = vunpack.c.h.s8.bf16 %v142_v11 }
  0x7a   :  { %266 = vmatpush1.bf16.msra.mxu0 %v180_v12  ;;  %v228_v12 = vunpack.c.h.s8.bf16 %v138_v8 }
  0x7b   :  { %267 = vmatprep.subr.bf16.mxu0 %v184_v13  ;;  %808 = vmatpush3.bf16.msra.mxu1 %v206_v20  ;;  %v232_v13 = vunpack.c.l.s8.bf16 %v142_v11  ;;  %v144_v20 = vld [vmem:[#allocation5 + $0x168] sm:$0xff] }
  0x7c   :  { %809 = vmatprep.subr.bf16.mxu1 %v233_v22  ;;  %v237_v21 = vunpack.c.l.s8.bf16 %v144_v20  ;;  %v241_v22 = vunpack.c.h.s8.bf16 %v145_v17  ;;  %v240_v23 = vunpack.c.h.s8.bf16 %v144_v20 }
  0x7e   :  { %268 = vmatpush1.bf16.msra.mxu0 %v183_v18  ;;  %v234_v18 = vunpack.c.h.s8.bf16 %v141_v14 }
  0x7f   :  { %269 = vmatprep.subr.bf16.mxu0 %v187_v19  ;;  %810 = vmatpush3.bf16.msra.mxu1 %v209_v27  ;;  %v238_v19 = vunpack.c.l.s8.bf16 %v145_v17  ;;  %v474_v27 = vunpack.c.l.s8.bf16 %v462_v26 }
  0x80   :  { %811 = vmatprep.subr.bf16.mxu1 %v236_v28 }
  0x82   :  { %270 = vmatpush1.bf16.msra.mxu0 %v186_v24  ;;  %v463_v24 = vld [vmem:[#allocation7 + $0x8] sm:$0xff] }
  0x83   :  { %271 = vmatprep.subr.bf16.mxu0 %v190_v25  ;;  %812 = vmatpush3.bf16.msra.mxu1 %v212_v32  ;;  %v475_v25 = vunpack.c.l.s8.bf16 %v463_v24  ;;  %v478_v28 = vunpack.c.h.s8.bf16 %v463_v24  ;;  %v465_v32 = vld [vmem:[#allocation7 + $0x18] sm:$0xff] }
  0x84   :  { %813 = vmatprep.subr.bf16.mxu1 %v239_v34  ;;  %v480_v33 = vunpack.c.l.s8.bf16 %v465_v32  ;;  %v483_v35 = vunpack.c.h.s8.bf16 %v465_v32 }
  0x86   :  { %272 = vmatpush1.bf16.msra.mxu0 %v189_v30  ;;  %v466_v30 = vld [vmem:[#allocation7 + $0x20] sm:$0xff] }
  0x87   :  { %273 = vmatprep.subr.bf16.mxu0 %v193_v31  ;;  %814 = vmatpush3.bf16.msra.mxu1 %v215_v39  ;;  %v481_v31 = vunpack.c.l.s8.bf16 %v466_v30  ;;  %v484_v34 = vunpack.c.h.s8.bf16 %v466_v30  ;;  %v486_v39 = vunpack.c.l.s8.bf16 %v468_v38  ;;  %v464_v30 = vld [vmem:[#allocation7 + $0x10] sm:$0xff] }
  0x88   :  { %815 = vmatprep.subr.bf16.mxu1 %v242_v40 }
  0x8a   :  { %274 = vmatpush1.bf16.msra.mxu0 %v192_v36  ;;  %v469_v36 = vld [vmem:[#allocation7 + $0x38] sm:$0xff] }
  0x8b   :  { %284 = vmatprep.subr.bf16.mxu0 %v196_v37  ;;  %816 = vmatpush3.bf16.msra.mxu1 %v218_v43  ;;  %v487_v37 = vunpack.c.l.s8.bf16 %v469_v36  ;;  %v490_v40 = vunpack.c.h.s8.bf16 %v469_v36  ;;  %v471_v43 = vld [vmem:[#allocation7 + $0x48] sm:$0xff] }
  0x8c   :  { %498 = vmatprep.subr.bf16.mxu1 %v475_v25  ;;  %v495_v55 = vunpack.c.h.s8.bf16 %v471_v43  ;;  %v467_v36 = vld [vmem:[#allocation7 + $0x28] sm:$0xff] }
  0x8d   :  { %276 = vmatmul.mubr.bf16.vlgmr.msra.gmra.mrb[0].mxu0 %v1175_v2  ;;  %v135_v2 = vld [vmem:[#allocation5 + $0x120] sm:$0xff] }
  0x8e   :  { %285 = vmatpush1.bf16.msra.mxu0 %v195_v41  ;;  %316 = vmatprep.mubr.bf16.mxu0 %v1177_v4  ;;  %v219_v3 = vunpack.c.l.s8.bf16 %v135_v2  ;;  %v223_v4 = vunpack.c.h.s8.bf16 %v136_v63  ;;  %v222_v6 = vunpack.c.h.s8.bf16 %v135_v2  ;;  %v489_v41 = vunpack.c.h.s8.bf16 %v468_v38 }
  0x8f   :  { %286 = vmatprep.subr.bf16.mxu0 %v199_v42  ;;  %398 = vmatmul.mubr.bf16.vlgmr.msra.gmra.mrb[4].mxu1 %v1184_v46  ;;  %v472_v42 = vld [vmem:[#allocation7 + $0x50] sm:$0xff]  ;;  %v485_v38 = vunpack.c.h.s8.bf16 %v467_v36 }
  0x90   :  { %499 = vmatpush1.bf16.msra.mxu1 %v474_v27  ;;  %v493_v44 = vunpack.c.l.s8.bf16 %v472_v42 }
  0x91   :  { %500 = vmatprep.subr.bf16.mxu1 %v478_v28 }
  0x92   :  { %287 = vmatpush1.bf16.msra.mxu0 %v198_v45  ;;  %v1057_v45 = vmov 0  }
  0x93   :  { %288 = vmatprep.subr.bf16.mxu0 %v202_v47  ;;  %530 = vmatprep.mubr.bf16.mxu1 %v1057_v45  ;;  %v492_v47 = vunpack.c.l.s8.bf16 %v471_v43  ;;  %v899_v45 = vld [vmem:[#allocation8] sm:$0xff]  }
  0x94   :  { %501 = vmatpush1.bf16.msra.mxu1 %v477_v29 }
  0x95   :  { %502 = vmatprep.subr.bf16.mxu1 %v481_v31 }
  0x96   :  { %289 = vmatpush1.bf16.msra.mxu0 %v201_v49  ;;  %v496_v49 = vunpack.c.h.s8.bf16 %v472_v42  ;;  %v473_v42 = vld [vmem:[#allocation7 + $0x58] sm:$0xff] }
  0x97   :  { %290 = vmatprep.subr.bf16.mxu0 %v205_v50  ;;  %v494_v43 = vunpack.c.l.s8.bf16 %v473_v42 }
  0x98   :  { %503 = vmatpush1.bf16.msra.mxu1 %v480_v33  ;;  %v476_v33 = vunpack.c.l.s8.bf16 %v464_v30 }
  0x99   :  { %504 = vmatprep.subr.bf16.mxu1 %v484_v34 }
  0x9a   :  { %291 = vmatpush1.bf16.msra.mxu0 %v204_v52 }
  0x9b   :  { %292 = vmatprep.subr.bf16.mxu0 %v208_v53 }
  0x9c   :  { %505 = vmatpush1.bf16.msra.mxu1 %v483_v35  ;;  %v479_v35 = vunpack.c.h.s8.bf16 %v464_v30 }
  0x9d   :  { %506 = vmatprep.subr.bf16.mxu1 %v487_v37  ;;  %v482_v37 = vunpack.c.l.s8.bf16 %v467_v36 }
  0x9e   :  { %293 = vmatpush1.bf16.msra.mxu0 %v207_v54 }
  0x9f   :  { %294 = vmatprep.subr.bf16.mxu0 %v211_v56 }
  0xa0   :  { %507 = vmatpush1.bf16.msra.mxu1 %v486_v39  ;;  %v470_v39 = vld [vmem:[#allocation7 + $0x40] sm:$0xff] }
  0xa1   :  { %508 = vmatprep.subr.bf16.mxu1 %v490_v40  ;;  %v488_v40 = vunpack.c.l.s8.bf16 %v470_v39 }
  0xa2   :  { %295 = vmatpush1.bf16.msra.mxu0 %v210_v58 }
  0xa3   :  { %296 = vmatprep.subr.bf16.mxu0 %v214_v59 }
  0xa4   :  { %509 = vmatpush1.bf16.msra.mxu1 %v489_v41  ;;  %v491_v41 = vunpack.c.h.s8.bf16 %v470_v39 }
  0xa5   :  { %510 = vmatprep.subr.bf16.mxu1 %v493_v44  ;;  %v497_v44 = vunpack.c.h.s8.bf16 %v473_v42 }
  0xa6   :  { %297 = vmatpush1.bf16.msra.mxu0 %v213_v61  ;;  %v407_v61 = vlaneseq }
  0xa7   :  { %298 = vmatprep.subr.bf16.mxu0 %v217_v62 }
  0xa8   :  { %511 = vmatpush1.bf16.msra.mxu1 %v492_v47  ;;  %v408_v62 = vshrl.u32 %v407_v61, 7  ;;  %v900_v47 = vld [vmem:[#allocation8 + $0x8] sm:$0xff]  }
  0xa9   :  { %512 = vmatprep.subr.bf16.mxu1 %v496_v49  ;;  %v902_v49 = vld [vmem:[#allocation8 + $0x18] sm:$0xff]  }
  0xaa   :  { %299 = vmatpush1.bf16.msra.mxu0 %v216_v0  ;;  %v1193_v63 = vsub.s32 0, %v408_v62  ;;  %v1195_v0 = vsub.s32 2, %v408_v62 }
  0xab   :  { %300 = vmatprep.subr.bf16.mxu0 %v220_v1  ;;  %v405_v1 = vld [vmem:[%s1256_s2] sm:$0x7] }
  0xac   :  { %513 = vmatpush1.bf16.msra.mxu1 %v495_v55  ;;  %v410_v2 = vrot.slane %v405_v1, %v1193_v63  ;;  %v579_v55 = vld [vmem:[%s1259_s5] sm:$0x7] }
  0xae   :  { %301 = vmatpush1.bf16.msra.mxu0 %v219_v3  ;;  %v425_v3 = vld [vmem:[%s1257_s3] sm:$0x7] }
  0xaf   :  { %302 = vmatprep.subr.bf16.mxu0 %v223_v4  ;;  %v418_v4 = vrot.slane %v405_v1, %v1195_v0  ;;  %v430_v5 = vrot.slane %v425_v3, %v1193_v63  ;;  %v438_v11 = vrot.slane %v425_v3, %v1195_v0 }
  0xb2   :  { %303 = vmatpush1.bf16.msra.mxu0 %v222_v6 }
  0xb3   :  { %304 = vmatprep.subr.bf16.mxu0 %v226_v7 }
  0xb6   :  { %305 = vmatpush1.bf16.msra.mxu0 %v225_v9 }
  0xb7   :  { %306 = vmatprep.subr.bf16.mxu0 %v229_v10 }
  0xba   :  { %307 = vmatpush1.bf16.msra.mxu0 %v228_v12 }
  0xbb   :  { %308 = vmatprep.subr.bf16.mxu0 %v232_v13  ;;  %v1207_v13 = vsub.s32 1, %v408_v62 }
  0xbd   :  { %v414_v17 = vrot.slane %v405_v1, %v1207_v13  ;;  %v434_v20 = vrot.slane %v425_v3, %v1207_v13 }
  0xbe   :  { %309 = vmatpush1.bf16.msra.mxu0 %v231_v15 }
  0xbf   :  { %310 = vmatprep.subr.bf16.mxu0 %v235_v16 }
  0xc2   :  { %311 = vmatpush1.bf16.msra.mxu0 %v234_v18 }
  0xc3   :  { %312 = vmatprep.subr.bf16.mxu0 %v238_v19 }
  0xc6   :  { %313 = vmatpush1.bf16.msra.mxu0 %v237_v21 }
  0xc7   :  { %314 = vmatprep.subr.bf16.mxu0 %v241_v22 }
  0xca   :  { %315 = vmatpush1.bf16.msra.mxu0 %v240_v23 }
  0xcd   :  { %317 = vmatmul.mubr.bf16.vlgmr.msra.gmra.mrb[0].mxu0 %v1184_v46  ;;  %v1058_v46 = vmov 0.0  }
  0xce   :  { %861 = vmatprep.subr.bf16.mxu0 %v1058_v46  ;;  %841 = vmatprep.subr.bf16.mxu1 %v1058_v46 }
  0xcf   :  { %877 = vmatprep.mubr.msk.bf16.mxu0 %vm1059_vm0, %v1058_v46  ;;  %862 = vmatpush3.bf16.msra.mxu0 %v899_v45 }
  0xd0   :  { %863 = vmatprep.subr.bf16.mxu0 %v1058_v46 }
  0xd3   :  { %864 = vmatpush3.bf16.msra.mxu0 %v900_v47 }
  0xd4   :  { %865 = vmatprep.subr.bf16.mxu0 %v1058_v46 }
 0x141   :  { %v795_v48 = vpop.f32.mrb[0].mxu1 }
 0x142   :  { %v796_v50 = vpop.f32.mrb[1].mxu1 }
 0x143   :  { %v797_v51 = vadd.f32 %v796_v50, %v795_v48  ;;  %v798_v52 = vpop.f32.mrb[2].mxu1  ;;  %v901_v48 = vld [vmem:[#allocation8 + $0x10] sm:$0xff]   ;;  %v903_v50 = vld [vmem:[#allocation8 + $0x20] sm:$0xff]  }
 0x144   :  { %v799_v53 = vpop.f32.mrb[3].mxu1  ;;  %866 = vmatpush3.bf16.msra.mxu0 %v901_v48  ;;  %v905_v52 = vld [vmem:[#allocation8 + $0x30] sm:$0xff]  }
 0x145   :  { %867 = vmatprep.subr.bf16.mxu0 %v1058_v46  ;;  %v906_v53 = vld [vmem:[#allocation8 + $0x38] sm:$0xff]  }
 0x148   :  { %868 = vmatpush3.bf16.msra.mxu0 %v902_v49 }
 0x149   :  { %869 = vmatprep.subr.bf16.mxu0 %v1058_v46 }
 0x14c   :  { %870 = vmatpush3.bf16.msra.mxu0 %v903_v50 }
 0x14d   :  { %871 = vmatprep.subr.bf16.mxu0 %v1058_v46 }
 0x162   :  { %v817_v54 = vpop.f32.mrb[4].mxu1 }
 0x163   :  { %v818_v56 = vpop.f32.mrb[5].mxu1 }
 0x164   :  { %v819_v57 = vadd.f32 %v818_v56, %v817_v54  ;;  %v820_v58 = vpop.f32.mrb[6].mxu1  ;;  %v599_v54 = vld [vmem:[%s1260_s6] sm:$0x7]  ;;  %v584_v56 = vrot.slane %v579_v55, %v1193_v63 }
 0x165   :  { %v821_v59 = vpop.f32.mrb[7].mxu1 }
 0x166   :  { %v400_v60 = vadd.f32 %v819_v57, %v797_v51  ;;  %v904_v51 = vld [vmem:[#allocation8 + $0x28] sm:$0xff]   ;;  %v604_v57 = vrot.slane %v599_v54, %v1193_v63  ;;  %v592_v63 = vrot.slane %v579_v55, %v1195_v0 }
 0x167   :  { %872 = vmatpush3.bf16.msra.mxu0 %v904_v51 }
 0x168   :  { %v424_v10 = vmul.f32 %v418_v4, %v400_v60  ;;  %873 = vmatprep.subr.bf16.mxu0 %v1058_v46  ;;  %v608_v4 = vrot.slane %v599_v54, %v1207_v13 }
 0x16a   :  { %v444_v16 = vadd.f32 %v438_v11, %v424_v10  ;;  %v612_v11 = vrot.slane %v599_v54, %v1195_v0  ;;  %v770_v0 = vld [vmem:[%s1262_s8] ss:$0 sm:$0xff] }
 0x16b   :  { %874 = vmatpush3.bf16.msra.mxu0 %v905_v52 }
 0x16c   :  { %v767_v18 = vmul.f32 -1.442695, %v444_v16  ;;  %875 = vmatprep.subr.bf16.mxu0 %v1058_v46 }
 0x16f   :  { %876 = vmatpush3.bf16.msra.mxu0 %v906_v53 }
 0x1a0   :  { %v318_v6 = vpop.f32.mrb[0].mxu0 }
 0x1a1   :  { %v422_v7 = vmul.f32 %v410_v2, %v318_v6  ;;  %v320_v8 = vpop.f32.mrb[1].mxu0  ;;  %v588_v2 = vrot.slane %v579_v55, %v1207_v13 }
 0x1a2   :  { %v322_v9 = vpop.f32.mrb[2].mxu0  ;;  %v423_v19 = vmul.f32 %v414_v17, %v320_v8 }
 0x1a3   :  { %v442_v12 = vadd.f32 %v430_v5, %v422_v7  ;;  %v323_v14 = vpop.f32.mrb[3].mxu0 }
 0x1a4   :  { %v443_v21 = vadd.f32 %v434_v20, %v423_v19 }
 0x1a5   :  { %v766_v15 = vmul.f32 -1.442695, %v442_v12 }
 0x1a7   :  { %907 = vpow2.f32 %v766_v15 }
 0x1a8   :  { %909 = vpow2.f32 %v767_v18 }
 0x1a9   :  { %911 = vtanh.f32 %v443_v21 }
 0x1b1   :  { %v908_v22 = vpop.eup %907 }
 0x1b2   :  { %v448_v23 = vadd.f32 1.0, %v908_v22  ;;  %v910_v24 = vpop.eup %909 }
 0x1b3   :  { %v455_v25 = vadd.f32 1.0, %v910_v24  ;;  %v912_v26 = vpop.eup %911 }
 0x1b4   :  { %913 = vrcp.f32 %v448_v23 }
 0x1b5   :  { %915 = vrcp.f32 %v455_v25 }
 0x1be   :  { %v914_v27 = vpop.eup %913 }
 0x1bf   :  { %v458_v28 = vmul.f32 %v914_v27, %v912_v26  ;;  %v916_v29 = vpop.eup %915 }
 0x1c1   :  { %917 = vtanh.f32 %v458_v28 }
 0x1cb   :  { %v918_v31 = vpop.eup %917 }
 0x1cc   :  { %v460_v32 = vmul.f32 %v918_v31, %v916_v29 }
 0x1ce   :  { %v461_v34 = vpack.c.bf16 %v460_v32, %v460_v32 }
 0x1d0   :  { %531 = vmatmul.mubr.bf16.vlgmr.msra.gmra.mrb[8].mxu1 %v461_v34 }
 0x1d1   :  { %842 = vmatpush3.bf16.msra.mxu1 %v476_v33  ;;  %857 = vmatprep.mubr.msk.bf16.mxu1 %vm1059_vm0, %v1058_v46 }
 0x1d2   :  { %843 = vmatprep.subr.bf16.mxu1 %v1058_v46 }
 0x1d5   :  { %844 = vmatpush3.bf16.msra.mxu1 %v479_v35 }
 0x1d6   :  { %845 = vmatprep.subr.bf16.mxu1 %v1058_v46 }
 0x1d9   :  { %846 = vmatpush3.bf16.msra.mxu1 %v482_v37 }
 0x1da   :  { %847 = vmatprep.subr.bf16.mxu1 %v1058_v46 }
 0x1dd   :  { %848 = vmatpush3.bf16.msra.mxu1 %v485_v38 }
 0x1de   :  { %849 = vmatprep.subr.bf16.mxu1 %v1058_v46 }
 0x1e1   :  { %850 = vmatpush3.bf16.msra.mxu1 %v488_v40 }
 0x1e2   :  { %851 = vmatprep.subr.bf16.mxu1 %v1058_v46 }
 0x1e5   :  { %852 = vmatpush3.bf16.msra.mxu1 %v491_v41 }
 0x1e6   :  { %853 = vmatprep.subr.bf16.mxu1 %v1058_v46 }
 0x1e9   :  { %854 = vmatpush3.bf16.msra.mxu1 %v494_v43 }
 0x1ea   :  { %855 = vmatprep.subr.bf16.mxu1 %v1058_v46 }
 0x1ed   :  { %856 = vmatpush3.bf16.msra.mxu1 %v497_v44 }
 0x1f0   :  { %858 = vmatmul.mubr.bf16.vlgmr.msra.gmra.mrb[12].mxu1 %v461_v34 }
 0x2a3   :  { %v532_v58 = vpop.f32.mrb[8].mxu1 }
 0x2a4   :  { %v596_v59 = vmul.f32 %v584_v56, %v532_v58  ;;  %v534_v60 = vpop.f32.mrb[9].mxu1 }
 0x2a5   :  { %v536_v61 = vpop.f32.mrb[10].mxu1  ;;  %v597_v3 = vmul.f32 %v588_v2, %v534_v60 }
 0x2a6   :  { %v616_v62 = vadd.f32 %v604_v57, %v596_v59  ;;  %v537_v1 = vpop.f32.mrb[11].mxu1 }
 0x2a7   :  { %v617_v5 = vadd.f32 %v608_v4, %v597_v3 }
 0x2a8   :  { %v768_v46 = vmul.f32 -1.442695, %v616_v62 }
 0x2aa   :  { %919 = vpow2.f32 %v768_v46 }
 0x2ab   :  { %921 = vtanh.f32 %v617_v5 }
 0x2b4   :  { %v920_v6 = vpop.eup %919 }
 0x2b5   :  { %v622_v7 = vadd.f32 1.0, %v920_v6  ;;  %v922_v8 = vpop.eup %921 }
 0x2b7   :  { %923 = vrcp.f32 %v622_v7 }
 0x2c1   :  { %v924_v9 = vpop.eup %923 }
 0x2c2   :  { %v632_v10 = vmul.f32 %v924_v9, %v922_v8 }
 0x2c3   :  { %v573_v12 = vpop.f32.mrb[12].mxu1 }
 0x2c4   :  { %v598_v14 = vmul.f32 %v592_v63, %v573_v12  ;;  %v859_v15 = vpop.f32.mrb[13].mxu1 }
 0x2c5   :  { %v576_v16 = vpop.f32.mrb[14].mxu1 }
 0x2c6   :  { %v618_v17 = vadd.f32 %v612_v11, %v598_v14  ;;  %v860_v18 = vpop.f32.mrb[15].mxu1 }
 0x2c8   :  { %v769_v19 = vmul.f32 -1.442695, %v618_v17 }
 0x2ca   :  { %925 = vpow2.f32 %v769_v19 }
 0x2cb   :  { %927 = vtanh.f32 %v632_v10 }
 0x2d4   :  { %v926_v13 = vpop.eup %925 }
 0x2d5   :  { %v629_v20 = vadd.f32 1.0, %v926_v13  ;;  %v928_v21 = vpop.eup %927 }
 0x2d7   :  { %929 = vrcp.f32 %v629_v20 }
 0x2e1   :  { %v930_v22 = vpop.eup %929 }
 0x2e2   :  { %v634_v23 = vmul.f32 %v930_v22, %v928_v21 }
 0x2e4   :  { %v635_v24 = vpack.c.bf16 %v634_v23, %v634_v23 }
 0x2e6   :  { %878 = vmatmul.mubr.bf16.vlgmr.msra.gmra.mrb[4].mxu0 %v635_v24 }
 0x3b9   :  { %v741_v25 = vpop.f32.mrb[4].mxu0 }
 0x3ba   :  { %v742_v26 = vadd.f32 %v770_v0, %v741_v25  ;;  %v879_v27 = vpop.f32.mrb[5].mxu0 }
 0x3bb   :  { %v744_v28 = vpop.f32.mrb[6].mxu0 }
 0x3bc   :  { %v747_v29 = vpack.c.bf16 %v742_v26, %v742_v26  ;;  %v880_v30 = vpop.f32.mrb[7].mxu0 }
 0x3be   :  { %748 = vst [vmem:[#allocation10] sm:$0x3] %v747_v29 }
 0x3bf   :  { %1030 = shalt.err (!%p1027_p8)
}
 0x3c0   :  { %s1031_s8 = scalar_lea.hbm %s1263_s9, 32 }
 0x3c1   :  { %p1032_p9 = scmp.ne.s32.totalorder %s1263_s9, %s1031_s8  ;;  %p1035_p10 = scmp.lt.u32.totalorder %s1031_s8, %s1263_s9 }
 0x3c3   :  { %p1037_p11 = pnand %p1035_p10, %p1032_p9 }
 0x3c5   :  { %1040 = shalt.err (!%p1037_p11)
}
 0x3c6   :  { %758 = dma.vmem_to_hbm [thread:$0]  %s756_s23, 32, %s1263_s9, [#allocation4]  }
 0x3c7   :  { %1047 = dma.done.wait [#allocation4], 32  }
 0x3c8   :  { %1048 = vsyncadd [#allocation4], 4294967264 }
 0x3c9   :  { %762 = vsyncpa [#allocation3], 1 }
 0x3ca   :  { %763 = vsyncpa [#allocation6], 1 }
 0x3cb   :  { %764 = vsyncpa [#allocation9], 1 }
 0x3cc   :  { %765 = vsyncpa [#allocation4], 1 }

</bundles_post_ra>
